<compile_context>
chip_gen: v7x
topology: tpu7x:2x2x1
jax: 0.10.0
libtpu: 0.0.40
codegen_flags: <defaults>
</compile_context>

<pallas_src>
import functools

import jax
import jax.numpy as jnp
from jax.experimental import pallas as pl
from jax.experimental.pallas import tpu as pltpu


# ---------------------------------------------------------------------------
# Hardware introspection (trace-time only; safe fallbacks)
# ---------------------------------------------------------------------------
def _device_kind() -> str:
    try:
        return jax.devices()[0].device_kind.lower()
    except Exception:
        return ""


def _vmem_cap_bytes() -> int:
    try:
        cap = int(pltpu.get_tpu_info().vmem_capacity_bytes)
        if cap > 0:
            return cap
    except Exception:
        pass
    if "v7" in _device_kind():
        return 64 * 1024 * 1024
    return 128 * 1024 * 1024


def _vmem_budget_bytes() -> int:
    cap = _vmem_cap_bytes()
    return max(32 * 1024 * 1024, min(int(0.75 * cap), cap - 16 * 1024 * 1024))


def _default_tiles():
    kind = _device_kind()
    if "v6" in kind:
        return 768, 512, 512   # v6e: highest compute/HBM ratio -> biggest M tile
    return 512, 512, 512       # v5e / v7x / unknown


# ---------------------------------------------------------------------------
# Kernels
# ---------------------------------------------------------------------------
def _full_k_kernel(x_ref, w_ref, o_ref):
    # x_ref: (tm, K) native dtype, w_ref: (K, tn) bf16, o_ref: (tm, tn).
    x = x_ref[...].astype(jnp.bfloat16)
    o_ref[...] = jnp.dot(
        x, w_ref[...], preferred_element_type=jnp.float32
    ).astype(o_ref.dtype)


def _make_k_tiled_kernel(tk: int, acc_into_out: bool):
    """x is full-K resident; W streams over the K grid axis (axis 2)."""

    def _partial(x_ref, w_ref):
        k = pl.program_id(2)
        off = pl.multiple_of(k * tk, tk)
        x = x_ref[:, pl.ds(off, tk)].astype(jnp.bfloat16)
        return jnp.dot(x, w_ref[...], preferred_element_type=jnp.float32)

    if acc_into_out:
        # f32 output block is resident across K: accumulate straight into it.
        def kernel(x_ref, w_ref, o_ref):
            @pl.when(pl.program_id(2) == 0)
            def _init():
                o_ref[...] = jnp.zeros_like(o_ref)

            o_ref[...] += _partial(x_ref, w_ref)

        return kernel

    def kernel(x_ref, w_ref, o_ref, acc_ref):
        @pl.when(pl.program_id(2) == 0)
        def _init():
            acc_ref[...] = jnp.zeros_like(acc_ref)

        acc_ref[...] += _partial(x_ref, w_ref)

        @pl.when(pl.program_id(2) == pl.num_programs(2) - 1)
        def _fin():
            o_ref[...] = acc_ref[...].astype(o_ref.dtype)

    return kernel


# ---------------------------------------------------------------------------
# Tiling helpers
# ---------------------------------------------------------------------------
def _pick_tile(dim: int, pref: int, aligns) -> int:
    """Largest tile <= pref that divides dim, preferring coarser alignment.
    Falls back to the full dimension (always a legal block shape)."""
    if dim <= pref:
        return dim
    for align in aligns:
        t = (pref // align) * align
        while t >= align:
            if dim % t == 0:
                return t
            t -= align
    return dim


# ---------------------------------------------------------------------------
# Wrapper
# ---------------------------------------------------------------------------
@functools.partial(jax.jit, static_argnames=("tm", "tn", "tk"))
def linear_base_forward(x, weight_t, *, tm=None, tn=None, tk=None):
    """y = x @ weight_t, with weight_t = W.T of shape (input_size, output_size)."""
    M, K = x.shape
    K2, N = weight_t.shape
    assert K == K2, "input_size mismatch"
    out_dtype = x.dtype
    x_bytes = jnp.dtype(x.dtype).itemsize
    out_bytes = jnp.dtype(out_dtype).itemsize

    tm_pref, tn_pref, tk_pref = _default_tiles()
    tm = tm_pref if tm is None else tm
    tn = tn_pref if tn is None else tn
    tk = tk_pref if tk is None else tk

    # Weight is expected bf16 already (one-time cast at init); no-op otherwise.
    w = weight_t if weight_t.dtype == jnp.bfloat16 else weight_t.astype(jnp.bfloat16)

    # Pad the token dim only if it is not sublane-aligned (no extra HBM pass otherwise).
    m_align = 16 if x.dtype == jnp.bfloat16 else 8
    m_pad = (-M) % m_align
    x_p = jnp.pad(x, ((0, m_pad), (0, 0))) if m_pad else x
    Mp = M + m_pad

    tm_ = _pick_tile(Mp, tm, (8,))
    tn_ = _pick_tile(N, tn, (256, 128))
    tk_ = _pick_tile(K, tk, (256, 128))

    # Keep >=2 parallel output blocks when possible so both v7x TensorCores get work
    # (negligible extra grid-step cost on single-TC chips).
    if (Mp // tm_) * (N // tn_) < 2:
        if N >= 256:
            split = _pick_tile(N, max(N // 2, 128), (256, 128))
            if split < N:
                tn_ = split
        elif Mp >= 2 * m_align:
            tm_ = _pick_tile(Mp, max(Mp // 2, m_align), (m_align,))

    acc_into_out = jnp.dtype(out_dtype) == jnp.dtype(jnp.float32)
    budget = _vmem_budget_bytes()

    def _need_full_k(tm_v, tn_v):
        return (2 * tm_v * K * x_bytes        # x block (native dtype), double buffered
                + tm_v * K * 2                # in-kernel bf16 cast temp
                + 2 * K * tn_v * 2            # full-K bf16 weight block, double buffered
                + 2 * tm_v * tn_v * out_bytes)

    def _need_k_tiled(tm_v, tn_v, tk_v):
        return (2 * tm_v * K * x_bytes
                + tm_v * tk_v * 2
                + 2 * tk_v * tn_v * 2
                + 2 * tm_v * tn_v * out_bytes
                + (0 if acc_into_out else tm_v * tn_v * 4))

    full_k = _need_full_k(tm_, tn_) <= budget

    if not full_k:
        # K too large for a resident weight tile: stream W over a K grid axis while x
        # stays full-K resident per M tile; shrink tm_/tk_ until the working set fits.
        while _need_k_tiled(tm_, tn_, tk_) > budget and tm_ > 8:
            smaller = _pick_tile(Mp, max(tm_ // 2, 8), (8,))
            if smaller >= tm_:
                break
            tm_ = smaller
        while _need_k_tiled(tm_, tn_, tk_) > budget and tk_ > 128:
            smaller = _pick_tile(K, max(tk_ // 2, 128), (256, 128))
            if smaller >= tk_:
                break
            tk_ = smaller

    weight_reads = Mp // tm_
    cost = pl.CostEstimate(
        flops=2 * M * N * K,
        transcendentals=0,
        bytes_accessed=int(
            Mp * K * x_bytes + weight_reads * N * K * 2 + Mp * N * out_bytes
        ),
    )

    if full_k:
        grid = (Mp // tm_, N // tn_)
        in_specs = [
            pl.BlockSpec((tm_, K), lambda i, j: (i, 0)),   # x: once per M tile
            pl.BlockSpec((K, tn_), lambda i, j: (0, j)),   # W_t: full-K column tile
        ]
        out_spec = pl.BlockSpec((tm_, tn_), lambda i, j: (i, j))
        scratch = []
        kernel = _full_k_kernel
        dims = ("parallel", "parallel")
    else:
        grid = (Mp // tm_, N // tn_, K // tk_)
        in_specs = [
            pl.BlockSpec((tm_, K), lambda i, j, k: (i, 0)),    # x: once per M tile
            pl.BlockSpec((tk_, tn_), lambda i, j, k: (k, j)),  # W_t streamed over K
        ]
        out_spec = pl.BlockSpec((tm_, tn_), lambda i, j, k: (i, j))
        scratch = [] if acc_into_out else [pltpu.VMEM((tm_, tn_), jnp.float32)]
        kernel = _make_k_tiled_kernel(tk_, acc_into_out)
        dims = ("parallel", "parallel", "arbitrary")

    out = pl.pallas_call(
        kernel,
        out_shape=jax.ShapeDtypeStruct((Mp, N), out_dtype),
        grid_spec=pltpu.PrefetchScalarGridSpec(
            num_scalar_prefetch=0,
            grid=grid,
            in_specs=in_specs,
            out_specs=out_spec,
            scratch_shapes=scratch,
        ),
        compiler_params=pltpu.CompilerParams(
            dimension_semantics=dims,
            vmem_limit_bytes=int(budget),
        ),
        cost_estimate=cost,
    )(x_p, w)

    return out[:M] if m_pad else out


# ---------------------------------------------------------------------------
# Module wrapper (single device: tp_rank=0, tp_size=1)
# ---------------------------------------------------------------------------
class LinearBasePallas:
    """JAX/Pallas counterpart of nano_vllm LinearBase (tp_size == 1)."""

    def __init__(self, input_size: int, output_size: int, tp_dim=None):
        self.input_size = input_size
        self.output_size = output_size
        self.tp_dim = tp_dim
        self.tp_rank = 0   # dist.get_rank()       -> single device
        self.tp_size = 1   # dist.get_world_size() -> single device
        # Deterministic synthetic weight in nn.Linear layout (output_size, input_size).
        key = jax.random.PRNGKey(0)
        w = jax.random.normal(key, (output_size, input_size), dtype=jnp.float32)
        w = w / jnp.sqrt(jnp.float32(input_size))
        self.weight = w.astype(jnp.bfloat16)          # (N, K), spec layout
        # One-time pre-transpose to (K, N) bf16: MXU-native RHS, no per-tile relayout.
        self.weight_t = w.T.astype(jnp.bfloat16)      # (K, N), kernel layout

    def __call__(self, x):
        return linear_base_forward(x, self.weight_t)


if __name__ == "__main__":
    seq, input_size, output_size = 8, 128, 256

    layer = LinearBasePallas(input_size, output_size, tp_dim=None)

    key = jax.random.PRNGKey(0)
    x = jax.random.normal(
        jax.random.fold_in(key, 1), (seq, input_size), dtype=jnp.float32
    )

    y = layer(x)
    jax.block_until_ready(y)

    # Reference in plain JAX (same numerics contract: bf16 operands, f32 accumulation).
    x_ref = x.astype(jnp.bfloat16).astype(jnp.float32)
    w_ref = layer.weight_t.astype(jnp.float32)
    y_ref = jnp.dot(x_ref, w_ref, preferred_element_type=jnp.float32)

    assert y.shape == (seq, output_size)
    assert y.dtype == jnp.float32
    assert jnp.allclose(y, y_ref, atol=2e-2, rtol=2e-2)

    print("KERNEL_OK")
</pallas_src>

<mosaic_0001>
module attributes {stable_mosaic.version = 11 : i64} {
  func.func @_full_k_kernel(%arg0: i32, %arg1: i32, %arg2: memref<8x128xf32, #tpu.memory_space<vmem>>, %arg3: memref<128x128xbf16, #tpu.memory_space<vmem>>, %arg4: memref<8x128xf32, #tpu.memory_space<vmem>>) attributes {dimension_semantics = [#tpu.dimension_semantics<parallel>, #tpu.dimension_semantics<parallel>], iteration_bounds = array<i64: 1, 2>, scalar_prefetch = 0 : i64, scratch_operands = 0 : i64, tpu.core_type = #tpu.core_type<tc>, window_params = [{transform_indices = @transform_0, window_bounds = array<i64: 8, 128>}, {transform_indices = @transform_1, window_bounds = array<i64: 128, 128>}, {transform_indices = @transform_2, window_bounds = array<i64: 8, 128>}]} {
    %c0 = arith.constant 0 : index
    %c0_0 = arith.constant 0 : index
    %0 = vector.load %arg2[%c0, %c0_0] : memref<8x128xf32, #tpu.memory_space<vmem>>, vector<8x128xf32>
    %1 = arith.truncf %0 : vector<8x128xf32> to vector<8x128xbf16>
    %c0_1 = arith.constant 0 : index
    %c0_2 = arith.constant 0 : index
    %2 = vector.load %arg3[%c0_1, %c0_2] : memref<128x128xbf16, #tpu.memory_space<vmem>>, vector<128x128xbf16>
    %cst = arith.constant dense<0.000000e+00> : vector<8x128xf32>
    %3 = tpu.matmul %1, %2, %cst {dimension_numbers = #tpu.dot_dimension_numbers<[1], [0], [0], [1], [0, 0, 1, 1], [], []>} : vector<8x128xbf16>, vector<128x128xbf16>, vector<8x128xf32> -> vector<8x128xf32>
    %c0_3 = arith.constant 0 : index
    %c0_4 = arith.constant 0 : index
    %4 = vector.load %arg4[%c0_3, %c0_4] : memref<8x128xf32, #tpu.memory_space<vmem>>, vector<8x128xf32>
    tpu.vector_store %arg4[%c0_3, %c0_4], %3 {strides = array<i32>} : memref<8x128xf32, #tpu.memory_space<vmem>>, vector<8x128xf32>,
    return
  }
  func.func @transform_0(%arg0: i32, %arg1: i32) -> (i32, i32) {
    %c0_i32 = arith.constant 0 : i32
    %c0_i32_0 = arith.constant 0 : i32
    return %arg0, %c0_i32 : i32, i32
  }
  func.func @transform_1(%arg0: i32, %arg1: i32) -> (i32, i32) {
    %c0_i32 = arith.constant 0 : i32
    %c0_i32_0 = arith.constant 0 : i32
    return %c0_i32, %arg1 : i32, i32
  }
  func.func @transform_2(%arg0: i32, %arg1: i32) -> (i32, i32) {
    %c0_i32 = arith.constant 0 : i32
    return %arg0, %arg1 : i32, i32
  }
}

</mosaic_0001>

<bundles_post_ra>
// kernel: linear_base_forward.1
= control target key start
LH: loop header
LB: loop body
LE: loop exit
PB: predicated region body
PF: predicated region fallthrough
CT: control target
= control target key end

     0   :  { %7 = vsyncpa [#allocation3], 0  ;;  %s940_s0 = inlined_call_operand.hbm [shape: f32[8,128], index: 0, kind: input, shape index: {}]   ;;  %s941_s1 = inlined_call_operand.hbm [shape: bf16[128,256], index: 1, kind: input, shape index: {}]   ;;  %s942_s2 = inlined_call_operand.hbm [shape: f32[8,256], index: 2, kind: output, shape index: {}]  }
   0x1   :  { %8 = vsyncpa [#allocation6], 0 }
   0x2   :  { %10 = vsyncpa [#allocation6 + $0x1], 0 }
   0x3   :  { %11 = vsyncpa [#allocation4], 0 }
   0x4   :  { %13 = vsyncpa [#allocation4 + $0x1], 0  ;;  %s720_s9 = smov 0   ;;  %s722_s10 = smov 0  }
   0x5   :  { %s724_s11 = smov 0   ;;  %s726_s12 = smov 0  }
   0x6   :  { %s728_s13 = smov 0   ;;  %s730_s14 = smov 0  }
   0x7 LB: > { %s413_s15 = sadd.s32 4294967295, %s695_s14   ;;  %s414_s16 = sadd.s32 4294967294, %s695_s14   ;;  %s695_s14 = sphi %s730_s14, %s19_s14   ;;  %s691_s13 = sphi %s728_s13, %s970_s13   ;;  %s687_s12 = sphi %s726_s12, %s969_s12   ;;  %s683_s11 = sphi %s724_s11, %s968_s11   ;;  %s679_s10 = sphi %s722_s10, %s967_s10   ;;  %s675_s9 = sphi %s720_s9, %s966_s9  }
   0x8   : > { %s64_s17 = sadd.s32 1, %s683_s11  ;;  %p71_p0 = scmp.ne.s32.totalorder %s683_s11, %s679_s10 }
   0x9   : > { %p72_p1 = scmp.eq.s32.totalorder %s695_s14, 0  ;;  %p77_p2 = scmp.ne.s32.totalorder %s679_s10, %s675_s9 }
   0xa   : > { %p758_p3 = scmp.eq.s32.totalorder %s413_s15, 0  ;;  %p103_p4 = scmp.eq.s32.totalorder %s413_s15, 1 }
   0xb   : > { %p762_p5 = por %p72_p1, %p71_p0  ;;  %p109_p6 = scmp.eq.s32.totalorder %s414_s16, 1 }
   0xc   : > { %s949_s18 = scalar_select %p758_p3, 1, 0 }
   0xd   : > { %p768_p7 = por %p758_p3, %p77_p2  ;;  %p772_p8 = por %p103_p4, %p71_p0 }
   0xe   : > { %p776_p9 = por %p109_p6, %p77_p2  ;;  %p415_p10 = scmp.ge.s32.totalorder %s695_s14, 1 }
   0xf   : > { %s951_s20 = scalar_select %p768_p7, 1, 0 }
  0x10   : > { %s952_s21 = scalar_select %p772_p8, 1, 0 }
  0x11   : > { %s953_s22 = scalar_select %p776_p9, 1, 0 }
  0x12   : > { %p116_p11 = scmp.lt.s32.totalorder %s695_s14, 3  ;;  %s697_s24 = smov [#allocation2]  }
  0x13   : > { %s131_s25 = sshll.u32 %s697_s24, 4  ;;  %p486_p1 = scmp.lt.s32.totalorder %s695_s14, 2  ;;  %s132_s25 = int_to_ptr.vmem [resolvable:$true] %s131_s25 }
  0x14   : > { %p783_p13 = pnand %p415_p10, %p116_p11  ;;  %s28_s28 = sadd.s32 1, %s691_s13 }
  0x15   : > { %p792_p4 = pnand %p486_p1, %p762_p5  ;;  %p803_p6 = scmp.ge.s32.totalorder %s28_s28, 2 }
  0x16   : > { %s954_s23 = scalar_select %p783_p13, 1, 0 }
  0x17   : > { %p473_p0 = pneg %p783_p13  ;;  %s142_s30 = sand.u32 1, %s683_s11  }
  0x18   : > { %s955_s26 = scalar_select %p792_p4, 1, 0 }
  0x19   : > { %p798_p2 = pnand %p473_p0, %p758_p3  ;;  %s551_s5 = scalar_lea.hbm %s940_s0, 128 }
  0x1a   : > { %s957_s29 = scalar_select %p803_p6, 1, 0 }
  0x1b   : > { %p552_p5 = scmp.ne.s32.totalorder %s940_s0, %s551_s5  ;;  %p553_p10 = pneg %p798_p2 }
  0x1c   : > { %p558_p0 = scmp.lt.u32.totalorder %s551_s5, %s940_s0 }
  0x1d   : > { %p554_p11 = pnand %p553_p10, %p552_p5 }
  0x1f   : > { %p555_p1 = pneg %p554_p11 }
  0x21   : > { %p560_p12 = pnand %p558_p0, %p555_p1 }
  0x23   : > { %563 = shalt.err (!%p560_p12)
}
  0x24   : > { %s564_s16 = scalar_lea.vmem %s132_s25, 128  ;;  %p572_p3 = scmp.lt.s32.totalorder %s132_s25, %s132_s25 }
  0x25   : > { %p565_p9 = scmp.ne.s32.totalorder %s132_s25, %s564_s16  ;;  %p573_p13 = scmp.lt.s32.totalorder %s564_s16, %s564_s16 }
  0x27   : > { %p567_p8 = pnand %p565_p9, %p553_p10  ;;  %p574_p4 = por %p573_p13, %p572_p3 }
  0x29   : > { %p568_p7 = pneg %p567_p8 }
  0x2b   : > { %p575_p6 = pnand %p574_p4, %p568_p7 }
  0x2d   : > { %578 = shalt.err (!%p575_p6)
}
  0x2e   : > { %476 = dma.hbm_to_vmem [thread:$0]  (!%p798_p2), %s940_s0, 128, %s132_s25, [#allocation3]  }
  0x2f   : > { %p958_p9 = scmp.ne.s32.totalorder %s957_s29, 0  ;;  %s418_s3 = sshll.u32 %s142_s30, 6 }
  0x30   : > { %s419_s5 = sshll.u32 %s691_s13, 6  ;;  %s146_s8 = scalar_lea.vmem [#allocation5], %s418_s3 }
  0x31   : > { %s972_s28 = smov (%p958_p9, %s28_s28), 0  ;;  %s834_s7 = scalar_lea.hbm %s941_s1, %s419_s5 }
  0x32   : > { %s61_s4 = ssub.s32 %s691_s13, %s972_s28  ;;  %s152_s15 = sshll.u32 %s146_s8, 4  ;;  %s841_s15 = int_to_ptr.vmem [resolvable:$true] %s152_s15 }
  0x33   : > { %p62_p3 = scmp.eq.s32.totalorder %s61_s4, 0  ;;  %s843_s29 = scalar_lea.sflag [#allocation6], %s142_s30 }
  0x34   : > { %s579_s16 = scalar_lea.hbm %s834_s7, 1024  ;;  %p959_p8 = scmp.ne.s32.totalorder %s955_s26, 0 }
  0x35   : > { %s839_s25 = scalar_select %p62_p3, %s683_s11, %s64_s17  }
  0x36   : > { %p580_p7 = scmp.ne.s32.totalorder %s834_s7, %s579_s16  ;;  %p581_p12 = pneg %p959_p8 }
  0x37   : > { %s584_s3 = scalar_lea.hbm %s941_s1, 2048  ;;  %p585_p2 = scmp.lt.u32.totalorder %s834_s7, %s941_s1 }
  0x38   : > { %p582_p13 = pnand %p581_p12, %p580_p7  ;;  %p586_p6 = scmp.lt.u32.totalorder %s584_s3, %s579_s16 }
  0x39   : > { %p588_p10 = scmp.lt.u32.totalorder %s579_s16, %s834_s7 }
  0x3a   : > { %p583_p4 = pneg %p582_p13  ;;  %p587_p5 = por %p586_p6, %p585_p2 }
  0x3c   : > { %p589_p11 = por %p588_p10, %p587_p5 }
  0x3e   : > { %p590_p1 = pnand %p589_p11, %p583_p4 }
  0x40   : > { %593 = shalt.err (!%p590_p1)
}
  0x41   : > { %s594_s17 = scalar_lea.vmem %s841_s15, 1024  ;;  %s698_s30 = smov [#allocation5]  }
  0x42   : > { %p595_p0 = scmp.ne.s32.totalorder %s841_s15, %s594_s17  ;;  %s599_s27 = sshll.u32 %s698_s30, 4  ;;  %s600_s27 = int_to_ptr.vmem [resolvable:$false] %s599_s27 }
  0x43   : > { %s601_s6 = scalar_lea.vmem %s600_s27, 2048  ;;  %p602_p7 = scmp.lt.s32.totalorder %s841_s15, %s600_s27 }
  0x44   : > { %p597_p9 = pnand %p595_p0, %p581_p12  ;;  %p603_p13 = scmp.lt.s32.totalorder %s601_s6, %s594_s17 }
  0x46   : > { %p598_p3 = pneg %p597_p9  ;;  %p604_p2 = por %p603_p13, %p602_p7 }
  0x48   : > { %p605_p6 = pnand %p604_p2, %p598_p3 }
  0x4a   : > { %608 = shalt.err (!%p605_p6)
}
  0x4b   : > { %s699_s8 = smov 128   ;;  %s700_s16 = smov 64  }
  0x4c   : > { %s701_s19 = smov 4   ;;  %p960_p12 = scmp.ne.s32.totalorder %s954_s23, 0 }
  0x4d   : > { %480 = dma.hbm_to_vmem [thread:$0]  (!%p959_p8), %s834_s7, 1024, %s841_s15, %s843_s29, %s699_s8, %s700_s16, %s701_s19  }
  0x4e   : > { %164 = sbr.rel (%p960_p12) target bundleno = 350 (0x15e), region = 28  ;;  %p961_p4 = scmp.ne.s32.totalorder (!%p960_p12), %s949_s18, 0 }
  0x55   : > { %662 = dma.done.wait (%p961_p4), [#allocation3], 128  }
  0x56   : > { %664 = vsyncadd (%p961_p4), [#allocation3], 4294967168  ;;  %s878_s24 = sand.u32 1, %s679_s10   ;;  %p962_p5 = scmp.ne.s32.totalorder %s951_s20, 0 }
  0x57   : > { %s422_s3 = sshll.u32 %s878_s24, 6  ;;  %s171_s4 = scalar_lea.sflag [#allocation6], %s878_s24 }
  0x58   : > { %s174_s5 = scalar_lea.vmem [#allocation5], %s422_s3 }
  0x59   : > { %666 = dma.done.wait (%p962_p5), %s171_s4, 1024  }
  0x5a   : > { %668 = vsyncadd (%p962_p5), %s171_s4, 4294966272  ;;  %v702_v0 = vmov 0.0   ;;  %vm703_vm0 = vmmov 0   ;;  %v543_v1 = vld [vmem:[%s174_s5] sm:$0xff]   ;;  %v544_v2 = vld [vmem:[%s174_s5 + $0x8] sm:$0xff]   ;;  %s423_s18 = sshll.u32 %s878_s24, 3 }
  0x5b   : > { %445 = vmatprep.subr.bf16.mxu0 %v702_v0  ;;  %461 = vmatprep.mubr.msk.bf16.mxu0 %vm703_vm0, %v702_v0  ;;  %v545_v3 = vld [vmem:[%s174_s5 + $0x10] sm:$0xff]   ;;  %v546_v4 = vld [vmem:[%s174_s5 + $0x18] sm:$0xff]   ;;  %v547_v5 = vld [vmem:[%s174_s5 + $0x20] sm:$0xff]   ;;  %s194_s20 = scalar_lea.vmem [#allocation7], %s423_s18  ;;  %s433_s26 = sshll.u32 %s687_s12, 7 }
  0x5c   : > { %446 = vmatpush3.bf16.msra.mxu0 %v543_v1  ;;  %v548_v6 = vld [vmem:[%s174_s5 + $0x28] sm:$0xff]   ;;  %v549_v7 = vld [vmem:[%s174_s5 + $0x30] sm:$0xff]   ;;  %v550_v8 = vld [vmem:[%s174_s5 + $0x38] sm:$0xff]   ;;  %s319_s23 = sshll.u32 %s194_s20, 4  ;;  %s893_s29 = scalar_lea.hbm %s942_s2, %s433_s26  ;;  %s888_s23 = int_to_ptr.vmem [resolvable:$true] %s319_s23 }
  0x5d   : > { %447 = vmatprep.subr.bf16.mxu0 %v702_v0  ;;  %v196_v9 = vld [vmem:[#allocation2] sm:$0xff]  ;;  %s304_s17 = scalar_lea.sflag [#allocation4], %s878_s24  ;;  %s609_s30 = scalar_lea.vmem %s888_s23, 128 }
  0x5e   : > { %v197_v10 = vpack.c.bf16 %v196_v9, %v196_v9  ;;  %p610_p8 = scmp.ne.s32.totalorder %s888_s23, %s609_s30  ;;  %p963_p10 = scmp.ne.s32.totalorder %s952_s21, 0 }
  0x5f   : > { %s704_s12 = smov [#allocation7]  }
  0x60   : > { %448 = vmatpush3.bf16.msra.mxu0 %v544_v2  ;;  %p611_p11 = pnand %p610_p8, %p963_p10  ;;  %s613_s27 = sshll.u32 %s704_s12, 4  ;;  %s614_s27 = int_to_ptr.vmem [resolvable:$false] %s613_s27 }
  0x61   : > { %449 = vmatprep.subr.bf16.mxu0 %v702_v0  ;;  %s615_s6 = scalar_lea.vmem %s614_s27, 256  ;;  %p616_p0 = scmp.lt.s32.totalorder %s888_s23, %s614_s27 }
  0x62   : > { %p612_p1 = pneg %p611_p11  ;;  %p617_p9 = scmp.lt.s32.totalorder %s615_s6, %s609_s30 }
  0x64   : > { %450 = vmatpush3.bf16.msra.mxu0 %v545_v3  ;;  %p618_p3 = por %p617_p9, %p616_p0 }
  0x65   : > { %451 = vmatprep.subr.bf16.mxu0 %v702_v0 }
  0x66   : > { %p619_p7 = pnand %p618_p3, %p612_p1 }
  0x68   : > { %452 = vmatpush3.bf16.msra.mxu0 %v546_v4 }
  0x69   : > { %453 = vmatprep.subr.bf16.mxu0 %v702_v0 }
  0x6c   : > { %454 = vmatpush3.bf16.msra.mxu0 %v547_v5 }
  0x6d   : > { %455 = vmatprep.subr.bf16.mxu0 %v702_v0 }
  0x70   : > { %456 = vmatpush3.bf16.msra.mxu0 %v548_v6 }
  0x71   : > { %457 = vmatprep.subr.bf16.mxu0 %v702_v0 }
  0x74   : > { %458 = vmatpush3.bf16.msra.mxu0 %v549_v7 }
  0x75   : > { %459 = vmatprep.subr.bf16.mxu0 %v702_v0 }
  0x78   : > { %460 = vmatpush3.bf16.msra.mxu0 %v550_v8 }
  0x7b   : > { %462 = vmatmul.mubr.bf16.vlgmr.msra.gmra.mrb[0].mxu0 %v197_v10 }
 0x14e   : > { %v296_v11 = vpop.f32.mrb[0].mxu0 }
 0x14f   : > { %302 = vst [vmem:[%s194_s20] sm:$0xff] %v296_v11  ;;  %v463_v12 = vpop.f32.mrb[1].mxu0 }
 0x150   : > { %v299_v13 = vpop.f32.mrb[2].mxu0 }
 0x151   : > { %622 = shalt.err (!%p619_p7)
}
 0x152   : > { %s623_s8 = scalar_lea.hbm %s893_s29, 128  ;;  %s627_s24 = scalar_lea.hbm %s942_s2, 256 }
 0x153   : > { %p624_p13 = scmp.ne.s32.totalorder %s893_s29, %s623_s8  ;;  %p628_p12 = scmp.lt.u32.totalorder %s893_s29, %s942_s2 }
 0x154   : > { %p629_p4 = scmp.lt.u32.totalorder %s627_s24, %s623_s8  ;;  %p631_p8 = scmp.lt.u32.totalorder %s623_s8, %s893_s29 }
 0x155   : > { %p625_p2 = pnand %p624_p13, %p963_p10 }
 0x156   : > { %p630_p5 = por %p629_p4, %p628_p12 }
 0x157   : > { %p626_p6 = pneg %p625_p2 }
 0x158   : > { %p632_p11 = por %p631_p8, %p630_p5 }
 0x15a   : > { %p633_p1 = pnand %p632_p11, %p626_p6 }
 0x15c   : > { %636 = shalt.err (!%p633_p1)
}
 0x15d   : > { %471 = dma.vmem_to_hbm [thread:$0]  (%p963_p10), %s888_s23, 128, %s893_s29, %s304_s17   ;;  %v464_v14 = vpop.f32.mrb[3].mxu0 }
 0x15e PF: > { %s331_s5 = sand.u32 1, %s675_s9   ;;  %p964_p0 = scmp.ne.s32.totalorder %s953_s22, 0 }
 0x15f   : > { %p965_p9 = scmp.ge.s32.totalorder %s695_s14, 2  ;;  %s332_s18 = scalar_lea.sflag [#allocation4], %s331_s5 }
 0x161   : > { %p482_p3 = pnand %p965_p9, %p964_p0 }
 0x163   : > { %670 = dma.done.wait (!%p482_p3), %s332_s18, 128  }
 0x164   : > { %672 = vsyncadd (!%p482_p3), %s332_s18, 4294967168  ;;  %s19_s14 = sadd.s32 1, %s695_s14   ;;  %s966_s9 = smov %s679_s10 }
 0x165   : > { %p16_p7 = scmp.ge.s32.totalorder %s19_s14, 4   ;;  %s967_s10 = smov %s683_s11 }
 0x166   : > { %s968_s11 = smov %s839_s25  ;;  %s969_s12 = smov %s691_s13 }
 0x167   : > { %s970_s13 = smov %s972_s28  ;;  %18 = sbr.rel (!%p16_p7) target bundleno = 7 (0x7), region = 79 }
 0x16e   :  { %337 = vsyncpa [#allocation3], 1 }
 0x16f   :  { %339 = vsyncpa [#allocation3 + $0x1], 1 }
 0x170   :  { %340 = vsyncpa [#allocation6], 1 }
 0x171   :  { %342 = vsyncpa [#allocation6 + $0x1], 1 }
 0x172   :  { %343 = vsyncpa [#allocation4], 1 }
 0x173   :  { %345 = vsyncpa [#allocation4 + $0x1], 1 }

</bundles_post_ra>
